<compile_context>
chip_gen: v7x
topology: tpu7x:2x2x1
jax: 0.10.0
libtpu: 0.0.40
codegen_flags: <defaults>
</compile_context>

<pallas_src>
import numpy as np

import jax
import jax.numpy as jnp
from jax.experimental import pallas as pl
from jax.experimental.pallas import tpu as pltpu


def _make_refpoint_kernel(num_levels, batch, rows_padded):
    """Kernel closed over *static* level count / batch / padded row count only."""
    L = int(num_levels)
    B = int(batch)
    R = int(rows_padded)  # 2L rounded up to a multiple of 8 (f32 sublanes)

    def kernel(vr_ref, g_ref, oh_ref, out_ref):
        # vr_ref  : [B*L*2]   f32 SMEM — flattened valid_ratios, (x, y) fastest.
        # g_ref   : [2, T]    f32 VMEM — normalized token centers (cx/W, cy/H).
        # oh_ref  : [L, T]    f32 VMEM — one-hot level membership per token.
        # out_ref : [B, R, T] f32 VMEM — row r = 2*l + c (c: 0=x, 1=y); rows >= 2L pad.
        gx = g_ref[0:1, :]                                       # [1, T]
        gy = g_ref[1:2, :]                                       # [1, T]
        ridx = jax.lax.broadcasted_iota(jnp.int32, (R, 1), 0)    # [R, 1]
        is_x_row = (ridx % 2) == 0                               # [R, 1]

        for b in range(B):                                       # static, small
            off = b * 2 * L

            def vr(l, c):  # scalar read from SMEM (cheap scalar-unit load)
                return vr_ref[off + 2 * l + c]

            # 1 / valid_ratio of each token's *own* level: exact scalar
            # reciprocals MAC'd through the one-hot (no per-lane vector divide).
            inv_x = oh_ref[0:1, :] * (1.0 / vr(0, 0))
            inv_y = oh_ref[0:1, :] * (1.0 / vr(0, 1))
            for l in range(1, L):
                oh = oh_ref[l:l + 1, :]
                inv_x = inv_x + oh * (1.0 / vr(l, 0))
                inv_y = inv_y + oh * (1.0 / vr(l, 1))

            base_x = gx * inv_x                                  # [1, T]
            base_y = gy * inv_y                                  # [1, T]
            base = jnp.where(is_x_row, base_x, base_y)           # [R, T]

            # per-row scale = valid_ratio[b, l, c] for row 2l+c; 0 for pad rows.
            vr_col = jnp.zeros((R, 1), jnp.float32)
            for l in range(L):
                vr_col = jnp.where(ridx == 2 * l, vr(l, 0), vr_col)
                vr_col = jnp.where(ridx == 2 * l + 1, vr(l, 1), vr_col)

            # one full-tile, full-sublane, unmasked store per batch element
            out_ref[b, :, :] = base * vr_col

    return kernel


def get_reference_points_pallas(spatial_shapes, valid_ratios,
                                max_tile_tokens=16384, lane_dense=False):
    """Pallas equivalent of TransformerEncoder.get_reference_points.

    spatial_shapes : [L, 2] (host-static, like the PyTorch loop over it)
    valid_ratios   : [bs, L, 2] float32
    returns        : [bs, S, L, 2] float32   (or [bs, 2L, S] if lane_dense=True)

    NOTE: like the PyTorch reference, a valid_ratio entry of exactly 0 yields
    inf/nan (no extra guard is added so the semantics match bit-for-bit).
    """
    spatial_shapes = tuple((int(h), int(w)) for h, w in spatial_shapes)
    L = len(spatial_shapes)
    S = sum(h * w for h, w in spatial_shapes)
    bs = int(valid_ratios.shape[0])
    R = max(8, pl.cdiv(2 * L, 8) * 8)  # output rows padded to f32 sublane count

    # ---- token tiling (lane axis) --------------------------------------------
    s_pad128 = pl.cdiv(S, 128) * 128
    bytes_per_tok = (bs * R + 2 + L) * 4          # output block + g + onehot, per token
    vmem_budget_per_buf = 5 << 20                 # ~10 MiB double-buffered: safe on all gens
    cap_vmem = max(128, (vmem_budget_per_buf // bytes_per_tok) // 128 * 128)
    tile_s = min(int(max_tile_tokens), s_pad128, cap_vmem)
    if tile_s >= s_pad128 and s_pad128 >= 256:
        # v7x has 2 TensorCores: keep >= 2 parallel grid steps when possible.
        tile_s = pl.cdiv(pl.cdiv(s_pad128, 2), 128) * 128
    n_s_tiles = pl.cdiv(s_pad128, tile_s)
    s_pad = n_s_tiles * tile_s

    # ---- host-static precompute (folds per-level W/H into the grid) ----------
    gx = np.full((s_pad,), 0.5, np.float32)          # cx / W  per token
    gy = np.full((s_pad,), 0.5, np.float32)          # cy / H  per token
    onehot = np.zeros((L, s_pad), np.float32)        # level membership
    off = 0
    for lvl, (H, W) in enumerate(spatial_shapes):
        ys, xs = np.meshgrid(
            np.linspace(0.5, H - 0.5, H, dtype=np.float32),
            np.linspace(0.5, W - 0.5, W, dtype=np.float32),
            indexing="ij",
        )
        n = H * W
        gx[off:off + n] = xs.reshape(-1) / np.float32(W)
        gy[off:off + n] = ys.reshape(-1) / np.float32(H)
        onehot[lvl, off:off + n] = 1.0
        off += n
    # Padded (dead) tokens: assign them to level 0 so denominators stay finite.
    onehot[0, S:] = 1.0

    g = jnp.asarray(np.stack([gx, gy], axis=0))            # [2, s_pad]
    onehot_j = jnp.asarray(onehot)                          # [L, s_pad]
    vr_flat = valid_ratios.astype(jnp.float32).reshape(-1)  # [bs*L*2] -> SMEM

    kernel = _make_refpoint_kernel(L, bs, R)

    blk_bytes = bytes_per_tok * tile_s
    vmem_limit = int(min(48 << 20, max(16 << 20, 4 * blk_bytes)))

    # Accurate traffic: output written once; g/onehot read once total (batch is
    # folded into the output block, so they are NOT re-fetched per batch).
    flops = bs * s_pad * (4 * L + 2 * R + 4)
    bytes_accessed = (bs * R * s_pad * 4          # output
                      + (2 + L) * s_pad * 4       # g + onehot (read once)
                      + bs * L * 2 * 4)           # valid_ratios

    out_t = pl.pallas_call(
        kernel,
        out_shape=jax.ShapeDtypeStruct((bs, R, s_pad), jnp.float32),
        grid=(n_s_tiles,),
        in_specs=[
            pl.BlockSpec(memory_space=pltpu.MemorySpace.SMEM),       # valid_ratios
            pl.BlockSpec((2, tile_s), lambda s: (0, s)),             # centers
            pl.BlockSpec((L, tile_s), lambda s: (0, s)),             # level one-hot
        ],
        out_specs=pl.BlockSpec((bs, R, tile_s), lambda s: (0, 0, s)),
        compiler_params=pltpu.CompilerParams(
            dimension_semantics=("parallel",),
            vmem_limit_bytes=vmem_limit),
        cost_estimate=pl.CostEstimate(
            flops=flops, transcendentals=0, bytes_accessed=bytes_accessed),
    )(vr_flat, g, onehot_j)

    out_t = out_t[:, :2 * L, :S]                 # drop row / lane padding
    if lane_dense:
        return out_t                             # [bs, 2L, S], row r = 2*l + c

    # PyTorch layout [bs, S, L, 2].  This is a real, materializing transpose in
    # XLA (~2x the kernel's output bytes of extra HBM traffic); downstream
    # Pallas consumers should prefer lane_dense=True and skip it.
    out = out_t.reshape(bs, L, 2, S)
    out = jnp.transpose(out, (0, 3, 1, 2))
    return out


def get_reference_points_ref(spatial_shapes, valid_ratios):
    """Pure-JAX transcription of the PyTorch reference (for verification)."""
    reference_points_list = []
    for lvl, (H_, W_) in enumerate(spatial_shapes):
        ref_y, ref_x = jnp.meshgrid(
            jnp.linspace(0.5, H_ - 0.5, H_, dtype=jnp.float32),
            jnp.linspace(0.5, W_ - 0.5, W_, dtype=jnp.float32),
            indexing="ij",
        )
        ref_y = ref_y.reshape(-1)[None] / (valid_ratios[:, None, lvl, 1] * H_)
        ref_x = ref_x.reshape(-1)[None] / (valid_ratios[:, None, lvl, 0] * W_)
        ref = jnp.stack((ref_x, ref_y), -1)
        reference_points_list.append(ref)
    reference_points = jnp.concatenate(reference_points_list, 1)
    reference_points = reference_points[:, :, None] * valid_ratios[:, None]
    return reference_points


class TransformerEncoder:
    """JAX/Pallas port of models/dino/deformable_transformer.TransformerEncoder."""

    def __init__(self, encoder_layer=None, num_layers=0, d_model=256, num_queries=300):
        if num_layers > 0:
            # TODO(synk): encoder_layer (DeformableTransformerEncoderLayer /
            # MSDeformAttn) is external to this module; only num_layers == 0 is
            # reproduced here.
            raise NotImplementedError(
                "encoder_layer definition is external to this module")
        self.layers = []
        self.num_queries = num_queries
        self.num_layers = num_layers
        self.d_model = d_model

    @staticmethod
    def get_reference_points(spatial_shapes, valid_ratios, device=None):
        del device
        return get_reference_points_pallas(spatial_shapes, valid_ratios)

    def forward(self, query, key, value, query_pos, query_key_padding_mask,
                spatial_shapes, level_start_index, valid_ratios):
        # reference_points: [bs, sum(hi*wi), num_level, 2]  (Pallas kernel)
        reference_points = self.get_reference_points(spatial_shapes, valid_ratios)
        for layer_id, layer in enumerate(self.layers):   # empty: num_layers == 0
            # NOTE: 'valule' keyword kept verbatim from the PyTorch source (typo
            # in the reference); this branch is dead code while layers == [].
            query = layer(query=query, key=key, valule=value, query_pos=query_pos,
                          reference_points=reference_points,
                          spatial_shapes=spatial_shapes,
                          level_start_index=level_start_index,
                          key_padding_mask=query_key_padding_mask)
        return query


if __name__ == "__main__":
    rng = jax.random.PRNGKey(0)
    bs, d_model = 2, 32
    spatial_shapes_py = ((8, 8), (4, 4))
    L = len(spatial_shapes_py)
    S = sum(h * w for h, w in spatial_shapes_py)  # 80

    k1, k2, k3, k4, k5, k6 = jax.random.split(rng, 6)
    query = jax.random.normal(k1, (bs, S, d_model), jnp.float32)
    key_t = jax.random.normal(k2, (bs, S, d_model), jnp.float32)
    value = jax.random.normal(k3, (bs, S, d_model), jnp.float32)
    query_pos = jax.random.normal(k4, (bs, S, d_model), jnp.float32)
    query_key_padding_mask = jnp.zeros((bs, S), jnp.bool_)
    spatial_shapes = jnp.array(spatial_shapes_py, jnp.int32)
    level_start_index = jnp.array(
        [0, spatial_shapes_py[0][0] * spatial_shapes_py[0][1]], jnp.int32)
    valid_ratios = jax.random.uniform(k5, (bs, L, 2), jnp.float32,
                                      minval=0.5, maxval=1.0)

    enc = TransformerEncoder(encoder_layer=None, num_layers=0,
                             d_model=d_model, num_queries=300)
    out = enc.forward(query, key_t, value, query_pos, query_key_padding_mask,
                      spatial_shapes, level_start_index, valid_ratios)
    out = jax.block_until_ready(out)

    # Verify the Pallas reference-point kernel (L=2 config used by forward).
    ref_pts = jax.block_until_ready(
        get_reference_points_pallas(spatial_shapes, valid_ratios))
    ref_pts_expected = get_reference_points_ref(spatial_shapes_py, valid_ratios)

    assert out.shape == (bs, S, d_model)
    assert bool(jnp.allclose(out, query))
    assert ref_pts.shape == (bs, S, L, 2)
    assert bool(jnp.allclose(ref_pts, ref_pts_expected, atol=1e-5, rtol=1e-5))

    # Second check: the standard deformable-DETR L=4 configuration (2L == 8 rows,
    # no row padding) to exercise the full-sublane store path.
    spatial_shapes4_py = ((8, 8), (4, 4), (2, 2), (1, 1))
    L4 = len(spatial_shapes4_py)
    S4 = sum(h * w for h, w in spatial_shapes4_py)
    valid_ratios4 = jax.random.uniform(k6, (bs, L4, 2), jnp.float32,
                                       minval=0.5, maxval=1.0)
    ref_pts4 = jax.block_until_ready(
        get_reference_points_pallas(jnp.array(spatial_shapes4_py, jnp.int32),
                                    valid_ratios4))
    ref_pts4_expected = get_reference_points_ref(spatial_shapes4_py, valid_ratios4)
    assert ref_pts4.shape == (bs, S4, L4, 2)
    assert bool(jnp.allclose(ref_pts4, ref_pts4_expected, atol=1e-5, rtol=1e-5))

    print("KERNEL_OK")
</pallas_src>

<mosaic_0001>
module attributes {stable_mosaic.version = 11 : i64} {
  func.func @kernel(%arg0: i32, %arg1: memref<8xf32, #tpu.memory_space<smem>>, %arg2: memref<2x128xf32, #tpu.memory_space<vmem>>, %arg3: memref<2x128xf32, #tpu.memory_space<vmem>>, %arg4: memref<2x8x128xf32, #tpu.memory_space<vmem>>) attributes {dimension_semantics = [#tpu.dimension_semantics<parallel>], iteration_bounds = array<i64: 1>, scalar_prefetch = 0 : i64, scratch_operands = 0 : i64, tpu.core_type = #tpu.core_type<tc>, window_params = [{transform_indices = @transform_0, window_bounds = array<i64: 8>}, {transform_indices = @transform_1, window_bounds = array<i64: 2, 128>}, {transform_indices = @transform_2, window_bounds = array<i64: 2, 128>}, {transform_indices = @transform_3, window_bounds = array<i64: 2, 8, 128>}]} {
    %c0 = arith.constant 0 : index
    %c0_0 = arith.constant 0 : index
    %0 = vector.load %arg2[%c0, %c0_0] : memref<2x128xf32, #tpu.memory_space<vmem>>, vector<1x128xf32>
    %c1 = arith.constant 1 : index
    %c0_1 = arith.constant 0 : index
    %1 = vector.load %arg2[%c1, %c0_1] : memref<2x128xf32, #tpu.memory_space<vmem>>, vector<1x128xf32>
    %2 = tpu.iota {dimensions = array<i32: 0>} : vector<8x1xi32>
    %c2_i32 = arith.constant 2 : i32
    %c0_i32 = arith.constant 0 : i32
    %3 = arith.cmpi eq, %c2_i32, %c0_i32 : i32
    %c1_i32 = arith.constant 1 : i32
    %4 = arith.select %3, %c1_i32, %c2_i32 : i32
    %5 = vector.broadcast %4 : i32 to vector<8x1xi32>
    %6 = arith.remsi %2, %5 : vector<8x1xi32>
    %c0_i32_2 = arith.constant 0 : i32
    %7 = vector.broadcast %c0_i32_2 : i32 to vector<8x1xi32>
    %8 = arith.cmpi ne, %6, %7 : vector<8x1xi32>
    %c0_i32_3 = arith.constant 0 : i32
    %9 = vector.broadcast %c0_i32_3 : i32 to vector<8x1xi32>
    %10 = arith.cmpi slt, %6, %9 : vector<8x1xi32>
    %c0_i32_4 = arith.constant 0 : i32
    %11 = arith.cmpi slt, %4, %c0_i32_4 : i32
    %12 = vector.broadcast %11 : i1 to vector<8x1xi1>
    %13 = vector.broadcast %12 : vector<8x1xi1> to vector<8x1xi1>
    %14 = arith.xori %10, %13 : vector<8x1xi1>
    %15 = arith.andi %14, %8 : vector<8x1xi1>
    %16 = vector.broadcast %4 : i32 to vector<8x1xi32>
    %17 = arith.addi %6, %16 : vector<8x1xi32>
    %18 = arith.select %15, %17, %6 : vector<8x1xi1>, vector<8x1xi32>
    %c0_i32_5 = arith.constant 0 : i32
    %19 = vector.broadcast %c0_i32_5 : i32 to vector<8x1xi32>
    %20 = arith.cmpi eq, %18, %19 : vector<8x1xi32>
    %c0_6 = arith.constant 0 : index
    %c0_7 = arith.constant 0 : index
    %21 = vector.load %arg3[%c0_6, %c0_7] : memref<2x128xf32, #tpu.memory_space<vmem>>, vector<1x128xf32>
    %c0_8 = arith.constant 0 : index
    %22 = memref.load %arg1[%c0_8] : memref<8xf32, #tpu.memory_space<smem>>
    %cst = arith.constant 1.000000e+00 : f32
    %23 = arith.divf %cst, %22 : f32
    %24 = vector.broadcast %23 : f32 to vector<1x128xf32>
    %25 = arith.mulf %21, %24 : vector<1x128xf32>
    %c0_9 = arith.constant 0 : index
    %c0_10 = arith.constant 0 : index
    %26 = vector.load %arg3[%c0_9, %c0_10] : memref<2x128xf32, #tpu.memory_space<vmem>>, vector<1x128xf32>
    %c1_11 = arith.constant 1 : index
    %27 = memref.load %arg1[%c1_11] : memref<8xf32, #tpu.memory_space<smem>>
    %cst_12 = arith.constant 1.000000e+00 : f32
    %28 = arith.divf %cst_12, %27 : f32
    %29 = vector.broadcast %28 : f32 to vector<1x128xf32>
    %30 = arith.mulf %26, %29 : vector<1x128xf32>
    %c1_13 = arith.constant 1 : index
    %c0_14 = arith.constant 0 : index
    %31 = vector.load %arg3[%c1_13, %c0_14] : memref<2x128xf32, #tpu.memory_space<vmem>>, vector<1x128xf32>
    %c2 = arith.constant 2 : index
    %32 = memref.load %arg1[%c2] : memref<8xf32, #tpu.memory_space<smem>>
    %cst_15 = arith.constant 1.000000e+00 : f32
    %33 = arith.divf %cst_15, %32 : f32
    %34 = vector.broadcast %33 : f32 to vector<1x128xf32>
    %35 = arith.mulf %31, %34 : vector<1x128xf32>
    %36 = arith.addf %25, %35 : vector<1x128xf32>
    %c3 = arith.constant 3 : index
    %37 = memref.load %arg1[%c3] : memref<8xf32, #tpu.memory_space<smem>>
    %cst_16 = arith.constant 1.000000e+00 : f32
    %38 = arith.divf %cst_16, %37 : f32
    %39 = vector.broadcast %38 : f32 to vector<1x128xf32>
    %40 = arith.mulf %31, %39 : vector<1x128xf32>
    %41 = arith.addf %30, %40 : vector<1x128xf32>
    %42 = arith.mulf %0, %36 : vector<1x128xf32>
    %43 = arith.mulf %1, %41 : vector<1x128xf32>
    %44 = vector.shape_cast %20 : vector<8x1xi1> to vector<8x1xi1>
    %45 = vector.broadcast %44 : vector<8x1xi1> to vector<8x128xi1>
    %46 = vector.shape_cast %42 : vector<1x128xf32> to vector<1x128xf32>
    %47 = vector.broadcast %46 : vector<1x128xf32> to vector<8x128xf32>
    %48 = vector.shape_cast %43 : vector<1x128xf32> to vector<1x128xf32>
    %49 = vector.broadcast %48 : vector<1x128xf32> to vector<8x128xf32>
    %50 = arith.select %45, %47, %49 : vector<8x128xi1>, vector<8x128xf32>
    %cst_17 = arith.constant 0.000000e+00 : f32
    %51 = vector.broadcast %cst_17 : f32 to vector<8x1xf32>
    %c0_i32_18 = arith.constant 0 : i32
    %52 = vector.broadcast %c0_i32_18 : i32 to vector<8x1xi32>
    %53 = arith.cmpi eq, %2, %52 : vector<8x1xi32>
    %c0_19 = arith.constant 0 : index
    %54 = memref.load %arg1[%c0_19] : memref<8xf32, #tpu.memory_space<smem>>
    %55 = vector.broadcast %54 : f32 to vector<8x1xf32>
    %56 = arith.select %53, %55, %51 : vector<8x1xi1>, vector<8x1xf32>
    %c1_i32_20 = arith.constant 1 : i32
    %57 = vector.broadcast %c1_i32_20 : i32 to vector<8x1xi32>
    %58 = arith.cmpi eq, %2, %57 : vector<8x1xi32>
    %c1_21 = arith.constant 1 : index
    %59 = memref.load %arg1[%c1_21] : memref<8xf32, #tpu.memory_space<smem>>
    %60 = vector.broadcast %59 : f32 to vector<8x1xf32>
    %61 = arith.select %58, %60, %56 : vector<8x1xi1>, vector<8x1xf32>
    %c2_i32_22 = arith.constant 2 : i32
    %62 = vector.broadcast %c2_i32_22 : i32 to vector<8x1xi32>
    %63 = arith.cmpi eq, %2, %62 : vector<8x1xi32>
    %c2_23 = arith.constant 2 : index
    %64 = memref.load %arg1[%c2_23] : memref<8xf32, #tpu.memory_space<smem>>
    %65 = vector.broadcast %64 : f32 to vector<8x1xf32>
    %66 = arith.select %63, %65, %61 : vector<8x1xi1>, vector<8x1xf32>
    %c3_i32 = arith.constant 3 : i32
    %67 = vector.broadcast %c3_i32 : i32 to vector<8x1xi32>
    %68 = arith.cmpi eq, %2, %67 : vector<8x1xi32>
    %c3_24 = arith.constant 3 : index
    %69 = memref.load %arg1[%c3_24] : memref<8xf32, #tpu.memory_space<smem>>
    %70 = vector.broadcast %69 : f32 to vector<8x1xf32>
    %71 = arith.select %68, %70, %66 : vector<8x1xi1>, vector<8x1xf32>
    %72 = vector.broadcast %71 : vector<8x1xf32> to vector<8x128xf32>
    %73 = arith.mulf %50, %72 : vector<8x128xf32>
    %c0_25 = arith.constant 0 : index
    %c0_26 = arith.constant 0 : index
    %c0_27 = arith.constant 0 : index
    %74 = vector.load %arg4[%c0_25, %c0_26, %c0_27] : memref<2x8x128xf32, #tpu.memory_space<vmem>>, vector<1x8x128xf32>
    %75 = vector.shape_cast %74 : vector<1x8x128xf32> to vector<8x128xf32>
    %76 = vector.shape_cast %73 : vector<8x128xf32> to vector<1x8x128xf32>
    tpu.vector_store %arg4[%c0_25, %c0_26, %c0_27], %76 {strides = array<i32>} : memref<2x8x128xf32, #tpu.memory_space<vmem>>, vector<1x8x128xf32>,
    %c0_28 = arith.constant 0 : index
    %c0_29 = arith.constant 0 : index
    %77 = vector.load %arg3[%c0_28, %c0_29] : memref<2x128xf32, #tpu.memory_space<vmem>>, vector<1x128xf32>
    %c4 = arith.constant 4 : index
    %78 = memref.load %arg1[%c4] : memref<8xf32, #tpu.memory_space<smem>>
    %cst_30 = arith.constant 1.000000e+00 : f32
    %79 = arith.divf %cst_30, %78 : f32
    %80 = vector.broadcast %79 : f32 to vector<1x128xf32>
    %81 = arith.mulf %77, %80 : vector<1x128xf32>
    %c0_31 = arith.constant 0 : index
    %c0_32 = arith.constant 0 : index
    %82 = vector.load %arg3[%c0_31, %c0_32] : memref<2x128xf32, #tpu.memory_space<vmem>>, vector<1x128xf32>
    %c5 = arith.constant 5 : index
    %83 = memref.load %arg1[%c5] : memref<8xf32, #tpu.memory_space<smem>>
    %cst_33 = arith.constant 1.000000e+00 : f32
    %84 = arith.divf %cst_33, %83 : f32
    %85 = vector.broadcast %84 : f32 to vector<1x128xf32>
    %86 = arith.mulf %82, %85 : vector<1x128xf32>
    %c1_34 = arith.constant 1 : index
    %c0_35 = arith.constant 0 : index
    %87 = vector.load %arg3[%c1_34, %c0_35] : memref<2x128xf32, #tpu.memory_space<vmem>>, vector<1x128xf32>
    %c6 = arith.constant 6 : index
    %88 = memref.load %arg1[%c6] : memref<8xf32, #tpu.memory_space<smem>>
    %cst_36 = arith.constant 1.000000e+00 : f32
    %89 = arith.divf %cst_36, %88 : f32
    %90 = vector.broadcast %89 : f32 to vector<1x128xf32>
    %91 = arith.mulf %87, %90 : vector<1x128xf32>
    %92 = arith.addf %81, %91 : vector<1x128xf32>
    %c7 = arith.constant 7 : index
    %93 = memref.load %arg1[%c7] : memref<8xf32, #tpu.memory_space<smem>>
    %cst_37 = arith.constant 1.000000e+00 : f32
    %94 = arith.divf %cst_37, %93 : f32
    %95 = vector.broadcast %94 : f32 to vector<1x128xf32>
    %96 = arith.mulf %87, %95 : vector<1x128xf32>
    %97 = arith.addf %86, %96 : vector<1x128xf32>
    %98 = arith.mulf %0, %92 : vector<1x128xf32>
    %99 = arith.mulf %1, %97 : vector<1x128xf32>
    %100 = vector.shape_cast %20 : vector<8x1xi1> to vector<8x1xi1>
    %101 = vector.broadcast %100 : vector<8x1xi1> to vector<8x128xi1>
    %102 = vector.shape_cast %98 : vector<1x128xf32> to vector<1x128xf32>
    %103 = vector.broadcast %102 : vector<1x128xf32> to vector<8x128xf32>
    %104 = vector.shape_cast %99 : vector<1x128xf32> to vector<1x128xf32>
    %105 = vector.broadcast %104 : vector<1x128xf32> to vector<8x128xf32>
    %106 = arith.select %101, %103, %105 : vector<8x128xi1>, vector<8x128xf32>
    %cst_38 = arith.constant 0.000000e+00 : f32
    %107 = vector.broadcast %cst_38 : f32 to vector<8x1xf32>
    %c0_i32_39 = arith.constant 0 : i32
    %108 = vector.broadcast %c0_i32_39 : i32 to vector<8x1xi32>
    %109 = arith.cmpi eq, %2, %108 : vector<8x1xi32>
    %c4_40 = arith.constant 4 : index
    %110 = memref.load %arg1[%c4_40] : memref<8xf32, #tpu.memory_space<smem>>
    %111 = vector.broadcast %110 : f32 to vector<8x1xf32>
    %112 = arith.select %109, %111, %107 : vector<8x1xi1>, vector<8x1xf32>
    %c1_i32_41 = arith.constant 1 : i32
    %113 = vector.broadcast %c1_i32_41 : i32 to vector<8x1xi32>
    %114 = arith.cmpi eq, %2, %113 : vector<8x1xi32>
    %c5_42 = arith.constant 5 : index
    %115 = memref.load %arg1[%c5_42] : memref<8xf32, #tpu.memory_space<smem>>
    %116 = vector.broadcast %115 : f32 to vector<8x1xf32>
    %117 = arith.select %114, %116, %112 : vector<8x1xi1>, vector<8x1xf32>
    %c2_i32_43 = arith.constant 2 : i32
    %118 = vector.broadcast %c2_i32_43 : i32 to vector<8x1xi32>
    %119 = arith.cmpi eq, %2, %118 : vector<8x1xi32>
    %c6_44 = arith.constant 6 : index
    %120 = memref.load %arg1[%c6_44] : memref<8xf32, #tpu.memory_space<smem>>
    %121 = vector.broadcast %120 : f32 to vector<8x1xf32>
    %122 = arith.select %119, %121, %117 : vector<8x1xi1>, vector<8x1xf32>
    %c3_i32_45 = arith.constant 3 : i32
    %123 = vector.broadcast %c3_i32_45 : i32 to vector<8x1xi32>
    %124 = arith.cmpi eq, %2, %123 : vector<8x1xi32>
    %c7_46 = arith.constant 7 : index
    %125 = memref.load %arg1[%c7_46] : memref<8xf32, #tpu.memory_space<smem>>
    %126 = vector.broadcast %125 : f32 to vector<8x1xf32>
    %127 = arith.select %124, %126, %122 : vector<8x1xi1>, vector<8x1xf32>
    %128 = vector.broadcast %127 : vector<8x1xf32> to vector<8x128xf32>
    %129 = arith.mulf %106, %128 : vector<8x128xf32>
    %c1_47 = arith.constant 1 : index
    %c0_48 = arith.constant 0 : index
    %c0_49 = arith.constant 0 : index
    %130 = vector.load %arg4[%c1_47, %c0_48, %c0_49] : memref<2x8x128xf32, #tpu.memory_space<vmem>>, vector<1x8x128xf32>
    %131 = vector.shape_cast %130 : vector<1x8x128xf32> to vector<8x128xf32>
    %132 = vector.shape_cast %129 : vector<8x128xf32> to vector<1x8x128xf32>
    tpu.vector_store %arg4[%c1_47, %c0_48, %c0_49], %132 {strides = array<i32>} : memref<2x8x128xf32, #tpu.memory_space<vmem>>, vector<1x8x128xf32>,
    return
  }
  func.func @transform_0(%arg0: i32) -> i32 {
    %c0_i32 = arith.constant 0 : i32
    %c0_i32_0 = arith.constant 0 : i32
    return %c0_i32 : i32
  }
  func.func @transform_1(%arg0: i32) -> (i32, i32) {
    %c0_i32 = arith.constant 0 : i32
    %c0_i32_0 = arith.constant 0 : i32
    return %c0_i32, %arg0 : i32, i32
  }
  func.func @transform_2(%arg0: i32) -> (i32, i32) {
    %c0_i32 = arith.constant 0 : i32
    %c0_i32_0 = arith.constant 0 : i32
    return %c0_i32, %arg0 : i32, i32
  }
  func.func @transform_3(%arg0: i32) -> (i32, i32, i32) {
    %c0_i32 = arith.constant 0 : i32
    %c0_i32_0 = arith.constant 0 : i32
    %c0_i32_1 = arith.constant 0 : i32
    return %c0_i32, %c0_i32_0, %arg0 : i32, i32, i32
  }
}

</mosaic_0001>

<bundles_post_ra>
// kernel: tpu_custom_call.1
= control target key start
LH: loop header
LB: loop body
LE: loop exit
PB: predicated region body
PF: predicated region fallthrough
CT: control target
= control target key end

     0   :  { %8 = vsyncpa [#allocation4], 0  ;;  %s332_s0 = inlined_call_operand.hbm [shape: f32[8], index: 0, kind: input, shape index: {}]   ;;  %s333_s1 = inlined_call_operand.vmem [shape: f32[2,128], index: 1, kind: input, shape index: {}]   ;;  %s334_s2 = inlined_call_operand.vmem [shape: f32[2,128], index: 2, kind: input, shape index: {}]   ;;  %s335_s3 = inlined_call_operand.hbm [shape: f32[2,8,128], index: 3, kind: output, shape index: {}]  }
   0x1   :  { %9 = vsyncpa [#allocation3], 0  ;;  %s208_s14 = scalar_lea.hbm %s332_s0, 16 }
   0x2   :  { %p209_p0 = scmp.ne.s32.totalorder %s332_s0, %s208_s14  ;;  %p212_p1 = scmp.lt.u32.totalorder %s208_s14, %s332_s0 }
   0x4   :  { %p214_p2 = pnand %p212_p1, %p209_p0 }
   0x6   :  { %217 = shalt.err (!%p214_p2)
}
   0x7   :  { %s244_s19 = smov [#allocation2]  }
   0x8   :  { %17 = dma.hbm_to_smem %s332_s0, 16, %s244_s19, [#allocation4]  }
   0x9   :  { %240 = dma.done.wait [#allocation4], 16  }
   0xa   :  { %241 = vsyncadd [#allocation4], 4294967280 }
   0xb   :  { %25 = sfence }
   0xc   :  { %v28_v0 = vlaneseq  ;;  %s44_s22 = sld [smem:[#allocation2]]  ;;  %s165_s23 = sld [smem:[#allocation2 + $0x1]]  ;;  %v43_v26 = vld [vmem:[%s334_s2] sm:$0x1]  ;;  %v56_v29 = vld [vmem:[%s334_s2 + $0x1] sm:$0x1] }
   0xd   :  { %s166_s24 = sld [smem:[#allocation2 + $0x2]]  ;;  %s168_s25 = sld [smem:[#allocation2 + $0x4]]  ;;  %v98_v33 = vld [vmem:[%s334_s2] sm:$0x1]  ;;  %v111_v40 = vld [vmem:[%s334_s2 + $0x1] sm:$0x1] }
   0xe   :  { %v280_v1 = vshrl.u32 %v28_v0, 7  ;;  %s169_s26 = sld [smem:[#allocation2 + $0x5]]  ;;  %s167_s27 = sld [smem:[#allocation2 + $0x3]]  ;;  %v26_v36 = vld [vmem:[%s333_s1] sm:$0x1] }
   0xf   :  { %s170_s28 = sld [smem:[#allocation2 + $0x6]]  ;;  %s171_s29 = sld [smem:[#allocation2 + $0x7]]  ;;  %v27_v42 = vld [vmem:[%s333_s1 + $0x1] sm:$0x1] }
  0x10   :  { %vm84_vm0 = vcmp.eq.s32.totalorder %v280_v1, 0  ;;  %vm87_vm1 = vcmp.eq.s32.totalorder %v280_v1, 1  ;;  %vm90_vm2 = vcmp.eq.s32.totalorder %v280_v1, 2  ;;  %vm93_vm3 = vcmp.eq.s32.totalorder %v280_v1, 3  ;;  %s245_s1 = smov [#allocation5]  }
  0x11   :  { %v77_v37 = vsub.s32 0, %v280_v1  ;;  %v34_v45 = vand.u32 1, %v280_v1  ;;  %s153_s2 = sshll.u32 %s245_s1, 4  ;;  %s154_s2 = int_to_ptr.vmem [resolvable:$true] %s153_s2 }
  0x12   :  { %v45_v2 = vstv %s44_s22  ;;  %v51_v3 = vstv %s165_s23  ;;  %s218_s22 = scalar_lea.vmem %s154_s2, 256  ;;  %p223_p4 = scmp.lt.s32.totalorder %s154_s2, %s154_s2 }
  0x13   :  { %192 = vrcp.f32 %v45_v2  ;;  %v58_v4 = vstv %s166_s24  ;;  %v86_v5 = vsel %vm84_vm0, %v45_v2, 0.0  ;;  %v100_v6 = vstv %s168_s25  ;;  %p219_p3 = scmp.ne.s32.totalorder %s154_s2, %s218_s22  ;;  %p224_p5 = scmp.lt.s32.totalorder %s218_s22, %s218_s22 }
  0x14   :  { %194 = vrcp.f32 %v51_v3  ;;  %v89_v7 = vsel %vm87_vm1, %v51_v3, %v86_v5  ;;  %v106_v8 = vstv %s169_s26  ;;  %v138_v9 = vsel %vm84_vm0, %v100_v6, 0.0 }
  0x15   :  { %v92_v10 = vsel %vm90_vm2, %v58_v4, %v89_v7  ;;  %196 = vrcp.f32 %v100_v6  ;;  %v140_v11 = vsel %vm87_vm1, %v106_v8, %v138_v9  ;;  %v65_v12 = vstv %s167_s27  ;;  %p225_p6 = por %p224_p5, %p223_p4 }
  0x16   :  { %198 = vrcp.f32 %v58_v4  ;;  %v113_v13 = vstv %s170_s28  ;;  %v120_v14 = vstv %s171_s29  ;;  %v290_v15 = vsel %vm93_vm3, %v65_v12, %v92_v10 }
  0x17   :  { %200 = vrcp.f32 %v65_v12  ;;  %v142_v16 = vsel %vm90_vm2, %v113_v13, %v140_v11  ;;  %vm42_vm4 = vcmp.eq.s32.totalorder %v34_v45, 0  ;;  %p226_p7 = pnand %p225_p6, %p219_p3 }
  0x18   :  { %202 = vrcp.f32 %v106_v8  ;;  %v296_v17 = vsel %vm93_vm3, %v120_v14, %v142_v16 }
  0x19   :  { %204 = vrcp.f32 %v113_v13 }
  0x1a   :  { %206 = vrcp.f32 %v120_v14 }
  0x1d   :  { %v193_v18 = vpop.eup %192 }
  0x1e   :  { %v195_v19 = vpop.eup %194  ;;  %172 = vpush %v193_v18 }
  0x1f   :  { %v197_v20 = vpop.eup %196  ;;  %174 = vpush %v195_v19 }
  0x20   :  { %v199_v21 = vpop.eup %198 }
  0x21   :  { %v201_v22 = vpop.eup %200  ;;  %176 = vpush %v199_v21 }
  0x22   :  { %v203_v23 = vpop.eup %202  ;;  %178 = vpush %v201_v22 }
  0x23   :  { %v205_v24 = vpop.eup %204  ;;  %180 = vpush %v197_v20 }
  0x24   :  { %v207_v25 = vpop.eup %206  ;;  %182 = vpush %v203_v23 }
  0x25   :  { %184 = vpush %v205_v24 }
  0x26   :  { %186 = vpush %v207_v25 }
  0x4f   :  { %s173_s4 = spop %172 }
  0x50   :  { %v48_v27 = vstv %s173_s4  ;;  %s175_s5 = spop %174 }
  0x51   :  { %v54_v28 = vstv %s175_s5  ;;  %v49_v30 = vmul.f32 %v48_v27, %v43_v26 }
  0x52   :  { %s177_s8 = spop %176  ;;  %v55_v31 = vmul.f32 %v54_v28, %v43_v26 }
  0x53   :  { %v61_v32 = vstv %s177_s8  ;;  %s179_s9 = spop %178 }
  0x54   :  { %v62_v34 = vmul.f32 %v61_v32, %v56_v29  ;;  %v68_v35 = vstv %s179_s9  ;;  %s181_s12 = spop %180 }
  0x55   :  { %v69_v38 = vmul.f32 %v68_v35, %v56_v29  ;;  %v103_v39 = vstv %s181_s12  ;;  %s183_s15 = spop %182 }
  0x56   :  { %v63_v41 = vadd.f32 %v62_v34, %v49_v30  ;;  %v104_v43 = vmul.f32 %v103_v39, %v98_v33  ;;  %v109_v44 = vstv %s183_s15  ;;  %s185_s20 = spop %184 }
  0x57   :  { %v70_v46 = vadd.f32 %v69_v38, %v55_v31  ;;  %v110_v47 = vmul.f32 %v109_v44, %v98_v33  ;;  %v116_v48 = vstv %s185_s20  ;;  %s187_s21 = spop %186 }
  0x58   :  { %v71_v49 = vmul.f32 %v63_v41, %v26_v36  ;;  %v117_v50 = vmul.f32 %v116_v48, %v111_v40  ;;  %v123_v51 = vstv %s187_s21 }
  0x59   :  { %v72_v52 = vmul.f32 %v70_v46, %v27_v42  ;;  %v124_v53 = vmul.f32 %v123_v51, %v111_v40 }
  0x5a   :  { %v78_v54 = vrot.slane %v71_v49, %v77_v37  ;;  %v118_v55 = vadd.f32 %v117_v50, %v104_v43 }
  0x5b   :  { %v82_v56 = vrot.slane %v72_v52, %v77_v37  ;;  %v125_v57 = vadd.f32 %v124_v53, %v110_v47 }
  0x5c   :  { %v126_v58 = vmul.f32 %v118_v55, %v26_v36 }
  0x5d   :  { %v127_v59 = vmul.f32 %v125_v57, %v27_v42  ;;  %v83_v60 = vsel %vm42_vm4, %v78_v54, %v82_v56 }
  0x5e   :  { %v131_v61 = vrot.slane %v126_v58, %v77_v37  ;;  %v96_v62 = vmul.f32 %v290_v15, %v83_v60 }
  0x5f   :  { %v135_v63 = vrot.slane %v127_v59, %v77_v37 }
  0x60   :  { %97 = vst [vmem:[#allocation5] sm:$0xff] %v96_v62 }
  0x61   :  { %v136_v0 = vsel %vm42_vm4, %v131_v61, %v135_v63 }
  0x62   :  { %v145_v1 = vmul.f32 %v296_v17, %v136_v0 }
  0x64   :  { %147 = vst [vmem:[#allocation5 + $0x8] sm:$0xff] %v145_v1 }
  0x65   :  { %229 = shalt.err (!%p226_p7)
}
  0x66   :  { %s230_s25 = scalar_lea.hbm %s335_s3, 256 }
  0x67   :  { %p231_p8 = scmp.ne.s32.totalorder %s335_s3, %s230_s25  ;;  %p234_p9 = scmp.lt.u32.totalorder %s230_s25, %s335_s3 }
  0x69   :  { %p236_p10 = pnand %p234_p9, %p231_p8 }
  0x6b   :  { %239 = shalt.err (!%p236_p10)
}
  0x6c   :  { %s246_s0 = smov 128   ;;  %s247_s30 = smov 8  }
  0x6d   :  { %159 = dma.vmem_to_hbm [thread:$0]  %s154_s2, 256, %s335_s3, [#allocation3], %s246_s0, %s246_s0, %s247_s30  }
  0x6e   :  { %242 = dma.done.wait [#allocation3], 256  }
  0x6f   :  { %243 = vsyncadd [#allocation3], 4294967040 }
  0x70   :  { %163 = vsyncpa [#allocation3], 1 }
  0x71   :  { %164 = vsyncpa [#allocation4], 1 }

</bundles_post_ra>
